<compile_context>
chip_gen: v7x
topology: tpu7x:2x2x1
jax: 0.10.0
libtpu: 0.0.40
codegen_flags: <defaults>
</compile_context>

<pallas_src>
import functools
import math

import jax
import jax.numpy as jnp
from jax import lax
from jax.experimental import pallas as pl
from jax.experimental.pallas import tpu as pltpu


def embedding_kernel(ids_ref, emb_hbm, out_ref, row_buf, sem, *,
                     tile, scale, vocab, num_inflight):
    """Gather `tile` embedding rows from HBM via async DMAs, scale, store.

    ids_ref : SMEM scalar-prefetch ref, shape (N_pad,) int32 (all token ids)
    emb_hbm : HBM ref (memory_space=pl.ANY), shape (vocab, D)
    out_ref : VMEM ref, shape (tile, D)  (this grid step's output rows)
    row_buf : VMEM scratch, shape (tile, D)
    sem     : DMA semaphore array, shape (num_inflight,)
    """
    base = pl.program_id(0) * tile

    def issue(t, slot):
        tok = ids_ref[base + t]
        tok = jnp.clip(tok, 0, vocab - 1)  # guard out-of-range ids
        pltpu.make_async_copy(
            emb_hbm.at[pl.ds(tok, 1), :],   # (1, D) row in HBM
            row_buf.at[pl.ds(t, 1), :],     # (1, D) row in VMEM
            sem.at[slot],
        ).start()

    def wait(t, slot):
        # Descriptor only supplies the semaphore + byte count (all rows equal).
        pltpu.make_async_copy(
            emb_hbm.at[pl.ds(0, 1), :],
            row_buf.at[pl.ds(t, 1), :],
            sem.at[slot],
        ).wait()

    n_pre = min(num_inflight, tile)

    # Prologue: fill the in-flight window.
    def prolog(t, c):
        issue(t, t % num_inflight)
        return c
    lax.fori_loop(0, n_pre, prolog, 0, unroll=True)

    # Steady state: wait for the oldest copy on this slot, then reuse the slot.
    def steady(t, c):
        slot = t % num_inflight
        wait(t - num_inflight, slot)
        issue(t, slot)
        return c
    lax.fori_loop(n_pre, tile, steady, 0)

    # Drain the remaining in-flight copies.
    def drain(t, c):
        wait(t, t % num_inflight)
        return c
    lax.fori_loop(max(tile - num_inflight, 0), tile, drain, 0)

    # One full-tile scale (f32) + cast; lane-dense unmasked store.
    out_ref[...] = (row_buf[...].astype(jnp.float32) * scale).astype(out_ref.dtype)


def embedding_forward(token_ids, emb_table, *, tile=128, num_inflight=8):
    """Pallas equivalent of: nn.Embedding(vocab, d_model)(token_ids) * sqrt(d_model)."""
    B, S = token_ids.shape
    V, D = emb_table.shape
    N = B * S

    # Pad the flattened token stream to a multiple of the tile; padding rows
    # gather row 0 and are sliced off afterwards.
    n_blocks = pl.cdiv(N, tile)
    N_pad = n_blocks * tile
    ids_flat = token_ids.reshape(N).astype(jnp.int32)
    if N_pad != N:
        ids_flat = jnp.pad(ids_flat, (0, N_pad - N))

    scale = math.sqrt(D)
    kernel = functools.partial(
        embedding_kernel, tile=tile, scale=scale, vocab=V, num_inflight=num_inflight
    )

    out_flat = pl.pallas_call(
        kernel,
        out_shape=jax.ShapeDtypeStruct((N_pad, D), emb_table.dtype),
        grid_spec=pltpu.PrefetchScalarGridSpec(
            num_scalar_prefetch=1,                       # token ids land in SMEM
            grid=(n_blocks,),
            in_specs=[
                pl.BlockSpec(memory_space=pl.ANY),       # table stays in HBM
            ],
            out_specs=pl.BlockSpec((tile, D), lambda i, ids: (i, 0)),
            scratch_shapes=[
                pltpu.VMEM((tile, D), emb_table.dtype),  # gathered rows
                pltpu.SemaphoreType.DMA((num_inflight,)),
            ],
        ),
        compiler_params=pltpu.CompilerParams(
            dimension_semantics=("parallel",),           # independent token tiles
        ),
    )(ids_flat, emb_table)

    return out_flat[:N].reshape(B, S, D)


if __name__ == "__main__":
    key = jax.random.PRNGKey(0)

    # --- Test 1: small, module-implied shapes (vocab=64, d_model=128, B=2, S=8).
    vocab_size, d_model = 64, 128
    B, S = 2, 8
    k_emb, k_ids, key = jax.random.split(key, 3)
    emb_table = jax.random.normal(k_emb, (vocab_size, d_model), dtype=jnp.float32) * 0.02
    token_ids = jax.random.randint(k_ids, (B, S), 0, vocab_size, dtype=jnp.int32)

    out = embedding_forward(token_ids, emb_table)
    out = jax.block_until_ready(out)
    ref = jnp.take(emb_table, token_ids, axis=0) * math.sqrt(d_model)
    assert out.shape == (B, S, d_model)
    assert jnp.allclose(out, ref, atol=1e-5, rtol=1e-5), "mismatch vs reference (test 1)"

    # --- Test 2: multiple grid steps + ragged padding path (N=200 -> pad to 256).
    vocab2, d_model2 = 1000, 256
    B2, S2 = 4, 50
    k_emb2, k_ids2, key = jax.random.split(key, 3)
    emb_table2 = jax.random.normal(k_emb2, (vocab2, d_model2), dtype=jnp.float32) * 0.02
    token_ids2 = jax.random.randint(k_ids2, (B2, S2), 0, vocab2, dtype=jnp.int32)

    out2 = embedding_forward(token_ids2, emb_table2)
    out2 = jax.block_until_ready(out2)
    ref2 = jnp.take(emb_table2, token_ids2, axis=0) * math.sqrt(d_model2)
    assert out2.shape == (B2, S2, d_model2)
    assert jnp.allclose(out2, ref2, atol=1e-5, rtol=1e-5), "mismatch vs reference (test 2)"

    print("KERNEL_OK")
</pallas_src>

<mosaic_0001>
module attributes {stable_mosaic.version = 11 : i64} {
  func.func @embedding_kernel(%arg0: i32, %arg1: memref<128xi32, #tpu.memory_space<smem>>, %arg2: memref<64x128xf32, #tpu.memory_space<any>>, %arg3: memref<128x128xf32, #tpu.memory_space<vmem>>, %arg4: memref<128x128xf32, #tpu.memory_space<vmem>>, %arg5: memref<8x!tpu.dma_semaphore, #tpu.memory_space<semaphore_mem>>) attributes {dimension_semantics = [#tpu.dimension_semantics<parallel>], iteration_bounds = array<i64: 1>, scalar_prefetch = 1 : i64, scratch_operands = 2 : i64, tpu.core_type = #tpu.core_type<tc>, window_params = [{}, {transform_indices = @transform_1, window_bounds = array<i64: 128, 128>}]} {
    %c128_i32 = arith.constant 128 : i32
    %0 = arith.muli %arg0, %c128_i32 : i32
    %c0_i32 = arith.constant 0 : i32
    %c8_i32 = arith.constant 8 : i32
    %c0_i32_0 = arith.constant 0 : i32
    %1 = arith.cmpi eq, %c8_i32, %c0_i32_0 : i32
    %c1_i32 = arith.constant 1 : i32
    %2 = arith.select %1, %c1_i32, %c8_i32 : i32
    %3 = arith.remsi %c0_i32, %2 : i32
    %c0_i32_1 = arith.constant 0 : i32
    %4 = arith.cmpi ne, %3, %c0_i32_1 : i32
    %c0_i32_2 = arith.constant 0 : i32
    %5 = arith.cmpi slt, %3, %c0_i32_2 : i32
    %c0_i32_3 = arith.constant 0 : i32
    %6 = arith.cmpi slt, %2, %c0_i32_3 : i32
    %7 = arith.xori %5, %6 : i1
    %8 = arith.andi %7, %4 : i1
    %9 = arith.addi %3, %2 : i32
    %10 = arith.select %8, %9, %3 : i32
    %11 = arith.addi %0, %c0_i32 : i32
    %12 = arith.index_cast %11 : i32 to index
    %13 = memref.load %arg1[%12] : memref<128xi32, #tpu.memory_space<smem>>
    %c0_i32_4 = arith.constant 0 : i32
    %c63_i32 = arith.constant 63 : i32
    %14 = arith.maxsi %c0_i32_4, %13 : i32
    %15 = arith.minsi %c63_i32, %14 : i32
    %c0_i32_5 = arith.constant 0 : i32
    %16 = tpu.memref_slice %arg2[%15, %c0_i32_5] : memref<64x128xf32, #tpu.memory_space<any>> -> memref<1x128xf32, #tpu.memory_space<any>>
    %c0_i32_6 = arith.constant 0 : i32
    %17 = tpu.memref_slice %arg4[%c0_i32, %c0_i32_6] : memref<128x128xf32, #tpu.memory_space<vmem>> -> memref<1x128xf32, #tpu.memory_space<vmem>>
    %18 = tpu.memref_slice %arg5[%10] : memref<8x!tpu.dma_semaphore, #tpu.memory_space<semaphore_mem>> -> memref<1x!tpu.dma_semaphore, #tpu.memory_space<semaphore_mem>>
    %19 = tpu.memref_squeeze %18 : memref<1x!tpu.dma_semaphore, #tpu.memory_space<semaphore_mem>> -> memref<!tpu.dma_semaphore, #tpu.memory_space<semaphore_mem>>
    tpu.enqueue_dma source(%16 : memref<1x128xf32, #tpu.memory_space<any>>) target(%17 : memref<1x128xf32, #tpu.memory_space<vmem>>) target_semaphore(%19 : memref<!tpu.dma_semaphore, #tpu.memory_space<semaphore_mem>>)
    %c1_i32_7 = arith.constant 1 : i32
    %c8_i32_8 = arith.constant 8 : i32
    %c0_i32_9 = arith.constant 0 : i32
    %20 = arith.cmpi eq, %c8_i32_8, %c0_i32_9 : i32
    %c1_i32_10 = arith.constant 1 : i32
    %21 = arith.select %20, %c1_i32_10, %c8_i32_8 : i32
    %22 = arith.remsi %c1_i32_7, %21 : i32
    %c0_i32_11 = arith.constant 0 : i32
    %23 = arith.cmpi ne, %22, %c0_i32_11 : i32
    %c0_i32_12 = arith.constant 0 : i32
    %24 = arith.cmpi slt, %22, %c0_i32_12 : i32
    %c0_i32_13 = arith.constant 0 : i32
    %25 = arith.cmpi slt, %21, %c0_i32_13 : i32
    %26 = arith.xori %24, %25 : i1
    %27 = arith.andi %26, %23 : i1
    %28 = arith.addi %22, %21 : i32
    %29 = arith.select %27, %28, %22 : i32
    %30 = arith.addi %0, %c1_i32_7 : i32
    %31 = arith.index_cast %30 : i32 to index
    %32 = memref.load %arg1[%31] : memref<128xi32, #tpu.memory_space<smem>>
    %c0_i32_14 = arith.constant 0 : i32
    %c63_i32_15 = arith.constant 63 : i32
    %33 = arith.maxsi %c0_i32_14, %32 : i32
    %34 = arith.minsi %c63_i32_15, %33 : i32
    %c0_i32_16 = arith.constant 0 : i32
    %35 = tpu.memref_slice %arg2[%34, %c0_i32_16] : memref<64x128xf32, #tpu.memory_space<any>> -> memref<1x128xf32, #tpu.memory_space<any>>
    %c0_i32_17 = arith.constant 0 : i32
    %36 = tpu.memref_slice %arg4[%c1_i32_7, %c0_i32_17] : memref<128x128xf32, #tpu.memory_space<vmem>> -> memref<1x128xf32, #tpu.memory_space<vmem>>
    %37 = tpu.memref_slice %arg5[%29] : memref<8x!tpu.dma_semaphore, #tpu.memory_space<semaphore_mem>> -> memref<1x!tpu.dma_semaphore, #tpu.memory_space<semaphore_mem>>
    %38 = tpu.memref_squeeze %37 : memref<1x!tpu.dma_semaphore, #tpu.memory_space<semaphore_mem>> -> memref<!tpu.dma_semaphore, #tpu.memory_space<semaphore_mem>>
    tpu.enqueue_dma source(%35 : memref<1x128xf32, #tpu.memory_space<any>>) target(%36 : memref<1x128xf32, #tpu.memory_space<vmem>>) target_semaphore(%38 : memref<!tpu.dma_semaphore, #tpu.memory_space<semaphore_mem>>)
    %c2_i32 = arith.constant 2 : i32
    %c8_i32_18 = arith.constant 8 : i32
    %c0_i32_19 = arith.constant 0 : i32
    %39 = arith.cmpi eq, %c8_i32_18, %c0_i32_19 : i32
    %c1_i32_20 = arith.constant 1 : i32
    %40 = arith.select %39, %c1_i32_20, %c8_i32_18 : i32
    %41 = arith.remsi %c2_i32, %40 : i32
    %c0_i32_21 = arith.constant 0 : i32
    %42 = arith.cmpi ne, %41, %c0_i32_21 : i32
    %c0_i32_22 = arith.constant 0 : i32
    %43 = arith.cmpi slt, %41, %c0_i32_22 : i32
    %c0_i32_23 = arith.constant 0 : i32
    %44 = arith.cmpi slt, %40, %c0_i32_23 : i32
    %45 = arith.xori %43, %44 : i1
    %46 = arith.andi %45, %42 : i1
    %47 = arith.addi %41, %40 : i32
    %48 = arith.select %46, %47, %41 : i32
    %49 = arith.addi %0, %c2_i32 : i32
    %50 = arith.index_cast %49 : i32 to index
    %51 = memref.load %arg1[%50] : memref<128xi32, #tpu.memory_space<smem>>
    %c0_i32_24 = arith.constant 0 : i32
    %c63_i32_25 = arith.constant 63 : i32
    %52 = arith.maxsi %c0_i32_24, %51 : i32
    %53 = arith.minsi %c63_i32_25, %52 : i32
    %c0_i32_26 = arith.constant 0 : i32
    %54 = tpu.memref_slice %arg2[%53, %c0_i32_26] : memref<64x128xf32, #tpu.memory_space<any>> -> memref<1x128xf32, #tpu.memory_space<any>>
    %c0_i32_27 = arith.constant 0 : i32
    %55 = tpu.memref_slice %arg4[%c2_i32, %c0_i32_27] : memref<128x128xf32, #tpu.memory_space<vmem>> -> memref<1x128xf32, #tpu.memory_space<vmem>>
    %56 = tpu.memref_slice %arg5[%48] : memref<8x!tpu.dma_semaphore, #tpu.memory_space<semaphore_mem>> -> memref<1x!tpu.dma_semaphore, #tpu.memory_space<semaphore_mem>>
    %57 = tpu.memref_squeeze %56 : memref<1x!tpu.dma_semaphore, #tpu.memory_space<semaphore_mem>> -> memref<!tpu.dma_semaphore, #tpu.memory_space<semaphore_mem>>
    tpu.enqueue_dma source(%54 : memref<1x128xf32, #tpu.memory_space<any>>) target(%55 : memref<1x128xf32, #tpu.memory_space<vmem>>) target_semaphore(%57 : memref<!tpu.dma_semaphore, #tpu.memory_space<semaphore_mem>>)
    %c3_i32 = arith.constant 3 : i32
    %c8_i32_28 = arith.constant 8 : i32
    %c0_i32_29 = arith.constant 0 : i32
    %58 = arith.cmpi eq, %c8_i32_28, %c0_i32_29 : i32
    %c1_i32_30 = arith.constant 1 : i32
    %59 = arith.select %58, %c1_i32_30, %c8_i32_28 : i32
    %60 = arith.remsi %c3_i32, %59 : i32
    %c0_i32_31 = arith.constant 0 : i32
    %61 = arith.cmpi ne, %60, %c0_i32_31 : i32
    %c0_i32_32 = arith.constant 0 : i32
    %62 = arith.cmpi slt, %60, %c0_i32_32 : i32
    %c0_i32_33 = arith.constant 0 : i32
    %63 = arith.cmpi slt, %59, %c0_i32_33 : i32
    %64 = arith.xori %62, %63 : i1
    %65 = arith.andi %64, %61 : i1
    %66 = arith.addi %60, %59 : i32
    %67 = arith.select %65, %66, %60 : i32
    %68 = arith.addi %0, %c3_i32 : i32
    %69 = arith.index_cast %68 : i32 to index
    %70 = memref.load %arg1[%69] : memref<128xi32, #tpu.memory_space<smem>>
    %c0_i32_34 = arith.constant 0 : i32
    %c63_i32_35 = arith.constant 63 : i32
    %71 = arith.maxsi %c0_i32_34, %70 : i32
    %72 = arith.minsi %c63_i32_35, %71 : i32
    %c0_i32_36 = arith.constant 0 : i32
    %73 = tpu.memref_slice %arg2[%72, %c0_i32_36] : memref<64x128xf32, #tpu.memory_space<any>> -> memref<1x128xf32, #tpu.memory_space<any>>
    %c0_i32_37 = arith.constant 0 : i32
    %74 = tpu.memref_slice %arg4[%c3_i32, %c0_i32_37] : memref<128x128xf32, #tpu.memory_space<vmem>> -> memref<1x128xf32, #tpu.memory_space<vmem>>
    %75 = tpu.memref_slice %arg5[%67] : memref<8x!tpu.dma_semaphore, #tpu.memory_space<semaphore_mem>> -> memref<1x!tpu.dma_semaphore, #tpu.memory_space<semaphore_mem>>
    %76 = tpu.memref_squeeze %75 : memref<1x!tpu.dma_semaphore, #tpu.memory_space<semaphore_mem>> -> memref<!tpu.dma_semaphore, #tpu.memory_space<semaphore_mem>>
    tpu.enqueue_dma source(%73 : memref<1x128xf32, #tpu.memory_space<any>>) target(%74 : memref<1x128xf32, #tpu.memory_space<vmem>>) target_semaphore(%76 : memref<!tpu.dma_semaphore, #tpu.memory_space<semaphore_mem>>)
    %c4_i32 = arith.constant 4 : i32
    %c8_i32_38 = arith.constant 8 : i32
    %c0_i32_39 = arith.constant 0 : i32
    %77 = arith.cmpi eq, %c8_i32_38, %c0_i32_39 : i32
    %c1_i32_40 = arith.constant 1 : i32
    %78 = arith.select %77, %c1_i32_40, %c8_i32_38 : i32
    %79 = arith.remsi %c4_i32, %78 : i32
    %c0_i32_41 = arith.constant 0 : i32
    %80 = arith.cmpi ne, %79, %c0_i32_41 : i32
    %c0_i32_42 = arith.constant 0 : i32
    %81 = arith.cmpi slt, %79, %c0_i32_42 : i32
    %c0_i32_43 = arith.constant 0 : i32
    %82 = arith.cmpi slt, %78, %c0_i32_43 : i32
    %83 = arith.xori %81, %82 : i1
    %84 = arith.andi %83, %80 : i1
    %85 = arith.addi %79, %78 : i32
    %86 = arith.select %84, %85, %79 : i32
    %87 = arith.addi %0, %c4_i32 : i32
    %88 = arith.index_cast %87 : i32 to index
    %89 = memref.load %arg1[%88] : memref<128xi32, #tpu.memory_space<smem>>
    %c0_i32_44 = arith.constant 0 : i32
    %c63_i32_45 = arith.constant 63 : i32
    %90 = arith.maxsi %c0_i32_44, %89 : i32
    %91 = arith.minsi %c63_i32_45, %90 : i32
    %c0_i32_46 = arith.constant 0 : i32
    %92 = tpu.memref_slice %arg2[%91, %c0_i32_46] : memref<64x128xf32, #tpu.memory_space<any>> -> memref<1x128xf32, #tpu.memory_space<any>>
    %c0_i32_47 = arith.constant 0 : i32
    %93 = tpu.memref_slice %arg4[%c4_i32, %c0_i32_47] : memref<128x128xf32, #tpu.memory_space<vmem>> -> memref<1x128xf32, #tpu.memory_space<vmem>>
    %94 = tpu.memref_slice %arg5[%86] : memref<8x!tpu.dma_semaphore, #tpu.memory_space<semaphore_mem>> -> memref<1x!tpu.dma_semaphore, #tpu.memory_space<semaphore_mem>>
    %95 = tpu.memref_squeeze %94 : memref<1x!tpu.dma_semaphore, #tpu.memory_space<semaphore_mem>> -> memref<!tpu.dma_semaphore, #tpu.memory_space<semaphore_mem>>
    tpu.enqueue_dma source(%92 : memref<1x128xf32, #tpu.memory_space<any>>) target(%93 : memref<1x128xf32, #tpu.memory_space<vmem>>) target_semaphore(%95 : memref<!tpu.dma_semaphore, #tpu.memory_space<semaphore_mem>>)
    %c5_i32 = arith.constant 5 : i32
    %c8_i32_48 = arith.constant 8 : i32
    %c0_i32_49 = arith.constant 0 : i32
    %96 = arith.cmpi eq, %c8_i32_48, %c0_i32_49 : i32
    %c1_i32_50 = arith.constant 1 : i32
    %97 = arith.select %96, %c1_i32_50, %c8_i32_48 : i32
    %98 = arith.remsi %c5_i32, %97 : i32
    %c0_i32_51 = arith.constant 0 : i32
    %99 = arith.cmpi ne, %98, %c0_i32_51 : i32
    %c0_i32_52 = arith.constant 0 : i32
    %100 = arith.cmpi slt, %98, %c0_i32_52 : i32
    %c0_i32_53 = arith.constant 0 : i32
    %101 = arith.cmpi slt, %97, %c0_i32_53 : i32
    %102 = arith.xori %100, %101 : i1
    %103 = arith.andi %102, %99 : i1
    %104 = arith.addi %98, %97 : i32
    %105 = arith.select %103, %104, %98 : i32
    %106 = arith.addi %0, %c5_i32 : i32
    %107 = arith.index_cast %106 : i32 to index
    %108 = memref.load %arg1[%107] : memref<128xi32, #tpu.memory_space<smem>>
    %c0_i32_54 = arith.constant 0 : i32
    %c63_i32_55 = arith.constant 63 : i32
    %109 = arith.maxsi %c0_i32_54, %108 : i32
    %110 = arith.minsi %c63_i32_55, %109 : i32
    %c0_i32_56 = arith.constant 0 : i32
    %111 = tpu.memref_slice %arg2[%110, %c0_i32_56] : memref<64x128xf32, #tpu.memory_space<any>> -> memref<1x128xf32, #tpu.memory_space<any>>
    %c0_i32_57 = arith.constant 0 : i32
    %112 = tpu.memref_slice %arg4[%c5_i32, %c0_i32_57] : memref<128x128xf32, #tpu.memory_space<vmem>> -> memref<1x128xf32, #tpu.memory_space<vmem>>
    %113 = tpu.memref_slice %arg5[%105] : memref<8x!tpu.dma_semaphore, #tpu.memory_space<semaphore_mem>> -> memref<1x!tpu.dma_semaphore, #tpu.memory_space<semaphore_mem>>
    %114 = tpu.memref_squeeze %113 : memref<1x!tpu.dma_semaphore, #tpu.memory_space<semaphore_mem>> -> memref<!tpu.dma_semaphore, #tpu.memory_space<semaphore_mem>>
    tpu.enqueue_dma source(%111 : memref<1x128xf32, #tpu.memory_space<any>>) target(%112 : memref<1x128xf32, #tpu.memory_space<vmem>>) target_semaphore(%114 : memref<!tpu.dma_semaphore, #tpu.memory_space<semaphore_mem>>)
    %c6_i32 = arith.constant 6 : i32
    %c8_i32_58 = arith.constant 8 : i32
    %c0_i32_59 = arith.constant 0 : i32
    %115 = arith.cmpi eq, %c8_i32_58, %c0_i32_59 : i32
    %c1_i32_60 = arith.constant 1 : i32
    %116 = arith.select %115, %c1_i32_60, %c8_i32_58 : i32
    %117 = arith.remsi %c6_i32, %116 : i32
    %c0_i32_61 = arith.constant 0 : i32
    %118 = arith.cmpi ne, %117, %c0_i32_61 : i32
    %c0_i32_62 = arith.constant 0 : i32
    %119 = arith.cmpi slt, %117, %c0_i32_62 : i32
    %c0_i32_63 = arith.constant 0 : i32
    %120 = arith.cmpi slt, %116, %c0_i32_63 : i32
    %121 = arith.xori %119, %120 : i1
    %122 = arith.andi %121, %118 : i1
    %123 = arith.addi %117, %116 : i32
    %124 = arith.select %122, %123, %117 : i32
    %125 = arith.addi %0, %c6_i32 : i32
    %126 = arith.index_cast %125 : i32 to index
    %127 = memref.load %arg1[%126] : memref<128xi32, #tpu.memory_space<smem>>
    %c0_i32_64 = arith.constant 0 : i32
    %c63_i32_65 = arith.constant 63 : i32
    %128 = arith.maxsi %c0_i32_64, %127 : i32
    %129 = arith.minsi %c63_i32_65, %128 : i32
    %c0_i32_66 = arith.constant 0 : i32
    %130 = tpu.memref_slice %arg2[%129, %c0_i32_66] : memref<64x128xf32, #tpu.memory_space<any>> -> memref<1x128xf32, #tpu.memory_space<any>>
    %c0_i32_67 = arith.constant 0 : i32
    %131 = tpu.memref_slice %arg4[%c6_i32, %c0_i32_67] : memref<128x128xf32, #tpu.memory_space<vmem>> -> memref<1x128xf32, #tpu.memory_space<vmem>>
    %132 = tpu.memref_slice %arg5[%124] : memref<8x!tpu.dma_semaphore, #tpu.memory_space<semaphore_mem>> -> memref<1x!tpu.dma_semaphore, #tpu.memory_space<semaphore_mem>>
    %133 = tpu.memref_squeeze %132 : memref<1x!tpu.dma_semaphore, #tpu.memory_space<semaphore_mem>> -> memref<!tpu.dma_semaphore, #tpu.memory_space<semaphore_mem>>
    tpu.enqueue_dma source(%130 : memref<1x128xf32, #tpu.memory_space<any>>) target(%131 : memref<1x128xf32, #tpu.memory_space<vmem>>) target_semaphore(%133 : memref<!tpu.dma_semaphore, #tpu.memory_space<semaphore_mem>>)
    %c7_i32 = arith.constant 7 : i32
    %c8_i32_68 = arith.constant 8 : i32
    %c0_i32_69 = arith.constant 0 : i32
    %134 = arith.cmpi eq, %c8_i32_68, %c0_i32_69 : i32
    %c1_i32_70 = arith.constant 1 : i32
    %135 = arith.select %134, %c1_i32_70, %c8_i32_68 : i32
    %136 = arith.remsi %c7_i32, %135 : i32
    %c0_i32_71 = arith.constant 0 : i32
    %137 = arith.cmpi ne, %136, %c0_i32_71 : i32
    %c0_i32_72 = arith.constant 0 : i32
    %138 = arith.cmpi slt, %136, %c0_i32_72 : i32
    %c0_i32_73 = arith.constant 0 : i32
    %139 = arith.cmpi slt, %135, %c0_i32_73 : i32
    %140 = arith.xori %138, %139 : i1
    %141 = arith.andi %140, %137 : i1
    %142 = arith.addi %136, %135 : i32
    %143 = arith.select %141, %142, %136 : i32
    %144 = arith.addi %0, %c7_i32 : i32
    %145 = arith.index_cast %144 : i32 to index
    %146 = memref.load %arg1[%145] : memref<128xi32, #tpu.memory_space<smem>>
    %c0_i32_74 = arith.constant 0 : i32
    %c63_i32_75 = arith.constant 63 : i32
    %147 = arith.maxsi %c0_i32_74, %146 : i32
    %148 = arith.minsi %c63_i32_75, %147 : i32
    %c0_i32_76 = arith.constant 0 : i32
    %149 = tpu.memref_slice %arg2[%148, %c0_i32_76] : memref<64x128xf32, #tpu.memory_space<any>> -> memref<1x128xf32, #tpu.memory_space<any>>
    %c0_i32_77 = arith.constant 0 : i32
    %150 = tpu.memref_slice %arg4[%c7_i32, %c0_i32_77] : memref<128x128xf32, #tpu.memory_space<vmem>> -> memref<1x128xf32, #tpu.memory_space<vmem>>
    %151 = tpu.memref_slice %arg5[%143] : memref<8x!tpu.dma_semaphore, #tpu.memory_space<semaphore_mem>> -> memref<1x!tpu.dma_semaphore, #tpu.memory_space<semaphore_mem>>
    %152 = tpu.memref_squeeze %151 : memref<1x!tpu.dma_semaphore, #tpu.memory_space<semaphore_mem>> -> memref<!tpu.dma_semaphore, #tpu.memory_space<semaphore_mem>>
    tpu.enqueue_dma source(%149 : memref<1x128xf32, #tpu.memory_space<any>>) target(%150 : memref<1x128xf32, #tpu.memory_space<vmem>>) target_semaphore(%152 : memref<!tpu.dma_semaphore, #tpu.memory_space<semaphore_mem>>)
    %c8_i32_78 = arith.constant 8 : i32
    %c8_i32_79 = arith.constant 8 : i32
    %c120_i32 = arith.constant 120 : i32
    %153 = arith.addi %c8_i32_79, %c120_i32 : i32
    %c1_i32_80 = arith.constant 1 : i32
    scf.for %arg6 = %c8_i32_79 to %153 step %c1_i32_80  : i32 {
      %c8_i32_89 = arith.constant 8 : i32
      %c0_i32_90 = arith.constant 0 : i32
      %159 = arith.cmpi eq, %c8_i32_89, %c0_i32_90 : i32
      %c1_i32_91 = arith.constant 1 : i32
      %160 = arith.select %159, %c1_i32_91, %c8_i32_89 : i32
      %161 = arith.remsi %arg6, %160 : i32
      %c0_i32_92 = arith.constant 0 : i32
      %162 = arith.cmpi ne, %161, %c0_i32_92 : i32
      %c0_i32_93 = arith.constant 0 : i32
      %163 = arith.cmpi slt, %161, %c0_i32_93 : i32
      %c0_i32_94 = arith.constant 0 : i32
      %164 = arith.cmpi slt, %160, %c0_i32_94 : i32
      %165 = arith.xori %163, %164 : i1
      %166 = arith.andi %165, %162 : i1
      %167 = arith.addi %161, %160 : i32
      %168 = arith.select %166, %167, %161 : i32
      %c8_i32_95 = arith.constant 8 : i32
      %169 = arith.subi %arg6, %c8_i32_95 : i32
      %c0_i32_96 = arith.constant 0 : i32
      %c0_i32_97 = arith.constant 0 : i32
      %170 = tpu.memref_slice %arg2[%c0_i32_96, %c0_i32_97] : memref<64x128xf32, #tpu.memory_space<any>> -> memref<1x128xf32, #tpu.memory_space<any>>
      %c0_i32_98 = arith.constant 0 : i32
      %171 = tpu.memref_slice %arg4[%169, %c0_i32_98] : memref<128x128xf32, #tpu.memory_space<vmem>> -> memref<1x128xf32, #tpu.memory_space<vmem>>
      %172 = tpu.memref_slice %arg5[%168] : memref<8x!tpu.dma_semaphore, #tpu.memory_space<semaphore_mem>> -> memref<1x!tpu.dma_semaphore, #tpu.memory_space<semaphore_mem>>
      %173 = tpu.memref_squeeze %172 : memref<1x!tpu.dma_semaphore, #tpu.memory_space<semaphore_mem>> -> memref<!tpu.dma_semaphore, #tpu.memory_space<semaphore_mem>>
      tpu.wait_dma2 semaphore(%173 : memref<!tpu.dma_semaphore, #tpu.memory_space<semaphore_mem>>) src(%170 : memref<1x128xf32, #tpu.memory_space<any>>) dst(%171 : memref<1x128xf32, #tpu.memory_space<vmem>>)
      %174 = arith.addi %0, %arg6 : i32
      %175 = arith.index_cast %174 : i32 to index
      %176 = memref.load %arg1[%175] : memref<128xi32, #tpu.memory_space<smem>>
      %c0_i32_99 = arith.constant 0 : i32
      %c63_i32_100 = arith.constant 63 : i32
      %177 = arith.maxsi %c0_i32_99, %176 : i32
      %178 = arith.minsi %c63_i32_100, %177 : i32
      %c0_i32_101 = arith.constant 0 : i32
      %179 = tpu.memref_slice %arg2[%178, %c0_i32_101] : memref<64x128xf32, #tpu.memory_space<any>> -> memref<1x128xf32, #tpu.memory_space<any>>
      %c0_i32_102 = arith.constant 0 : i32
      %180 = tpu.memref_slice %arg4[%arg6, %c0_i32_102] : memref<128x128xf32, #tpu.memory_space<vmem>> -> memref<1x128xf32, #tpu.memory_space<vmem>>
      %181 = tpu.memref_slice %arg5[%168] : memref<8x!tpu.dma_semaphore, #tpu.memory_space<semaphore_mem>> -> memref<1x!tpu.dma_semaphore, #tpu.memory_space<semaphore_mem>>
      %182 = tpu.memref_squeeze %181 : memref<1x!tpu.dma_semaphore, #tpu.memory_space<semaphore_mem>> -> memref<!tpu.dma_semaphore, #tpu.memory_space<semaphore_mem>>
      tpu.enqueue_dma source(%179 : memref<1x128xf32, #tpu.memory_space<any>>) target(%180 : memref<1x128xf32, #tpu.memory_space<vmem>>) target_semaphore(%182 : memref<!tpu.dma_semaphore, #tpu.memory_space<semaphore_mem>>)
    }
    %c120_i32_81 = arith.constant 120 : i32
    %c120_i32_82 = arith.constant 120 : i32
    %c8_i32_83 = arith.constant 8 : i32
    %154 = arith.addi %c120_i32_82, %c8_i32_83 : i32
    %c1_i32_84 = arith.constant 1 : i32
    scf.for %arg6 = %c120_i32_82 to %154 step %c1_i32_84  : i32 {
      %c8_i32_89 = arith.constant 8 : i32
      %c0_i32_90 = arith.constant 0 : i32
      %159 = arith.cmpi eq, %c8_i32_89, %c0_i32_90 : i32
      %c1_i32_91 = arith.constant 1 : i32
      %160 = arith.select %159, %c1_i32_91, %c8_i32_89 : i32
      %161 = arith.remsi %arg6, %160 : i32
      %c0_i32_92 = arith.constant 0 : i32
      %162 = arith.cmpi ne, %161, %c0_i32_92 : i32
      %c0_i32_93 = arith.constant 0 : i32
      %163 = arith.cmpi slt, %161, %c0_i32_93 : i32
      %c0_i32_94 = arith.constant 0 : i32
      %164 = arith.cmpi slt, %160, %c0_i32_94 : i32
      %165 = arith.xori %163, %164 : i1
      %166 = arith.andi %165, %162 : i1
      %167 = arith.addi %161, %160 : i32
      %168 = arith.select %166, %167, %161 : i32
      %c0_i32_95 = arith.constant 0 : i32
      %c0_i32_96 = arith.constant 0 : i32
      %169 = tpu.memref_slice %arg2[%c0_i32_95, %c0_i32_96] : memref<64x128xf32, #tpu.memory_space<any>> -> memref<1x128xf32, #tpu.memory_space<any>>
      %c0_i32_97 = arith.constant 0 : i32
      %170 = tpu.memref_slice %arg4[%arg6, %c0_i32_97] : memref<128x128xf32, #tpu.memory_space<vmem>> -> memref<1x128xf32, #tpu.memory_space<vmem>>
      %171 = tpu.memref_slice %arg5[%168] : memref<8x!tpu.dma_semaphore, #tpu.memory_space<semaphore_mem>> -> memref<1x!tpu.dma_semaphore, #tpu.memory_space<semaphore_mem>>
      %172 = tpu.memref_squeeze %171 : memref<1x!tpu.dma_semaphore, #tpu.memory_space<semaphore_mem>> -> memref<!tpu.dma_semaphore, #tpu.memory_space<semaphore_mem>>
      tpu.wait_dma2 semaphore(%172 : memref<!tpu.dma_semaphore, #tpu.memory_space<semaphore_mem>>) src(%169 : memref<1x128xf32, #tpu.memory_space<any>>) dst(%170 : memref<1x128xf32, #tpu.memory_space<vmem>>)
    }
    %c8_i32_85 = arith.constant 8 : i32
    %c0 = arith.constant 0 : index
    %c0_86 = arith.constant 0 : index
    %155 = vector.load %arg4[%c0, %c0_86] : memref<128x128xf32, #tpu.memory_space<vmem>>, vector<128x128xf32>
    %cst = arith.constant 11.3137083 : f32
    %156 = vector.broadcast %cst : f32 to vector<128x128xf32>
    %157 = arith.mulf %155, %156 : vector<128x128xf32>
    %c0_87 = arith.constant 0 : index
    %c0_88 = arith.constant 0 : index
    %158 = vector.load %arg3[%c0_87, %c0_88] : memref<128x128xf32, #tpu.memory_space<vmem>>, vector<128x128xf32>
    tpu.vector_store %arg3[%c0_87, %c0_88], %157 {strides = array<i32>} : memref<128x128xf32, #tpu.memory_space<vmem>>, vector<128x128xf32>,
    return
  }
  func.func @transform_1(%arg0: i32, %arg1: memref<128xi32, #tpu.memory_space<smem>>) -> (i32, i32) {
    %c0_i32 = arith.constant 0 : i32
    %c0_i32_0 = arith.constant 0 : i32
    return %arg0, %c0_i32 : i32, i32
  }
}

</mosaic_0001>

<bundles_post_ra>
// kernel: tpu_custom_call.1
= control target key start
LH: loop header
LB: loop body
LE: loop exit
PB: predicated region body
PF: predicated region fallthrough
CT: control target
= control target key end

     0   :  { %s1004_s0 = inlined_call_operand.hbm [shape: s32[128], index: 0, kind: input, shape index: {}]   ;;  %s1005_s1 = inlined_call_operand.hbm [shape: f32[64,128], index: 1, kind: input, shape index: {}]   ;;  %s1006_s2 = inlined_call_operand.hbm [shape: f32[128,128], index: 2, kind: output, shape index: {}]  }
   0x1   :  { %s513_s11 = scalar_lea.hbm %s1004_s0, 16 }
   0x2   :  { %p514_p0 = scmp.ne.s32.totalorder %s1004_s0, %s513_s11  ;;  %p517_p1 = scmp.lt.u32.totalorder %s513_s11, %s1004_s0 }
   0x4   :  { %p519_p2 = pnand %p517_p1, %p514_p0 }
   0x6   :  { %522 = shalt.err (!%p519_p2)  }
   0x7   :  { %s785_s16 = smov [#allocation5]  }
   0x8   :  { %8 = dma.hbm_to_smem %s1004_s0, 16, %s785_s16, [#allocation4] }
   0x9   :  { %769 = dma.done.wait [#allocation4], 16 }
   0xa   :  { %770 = vsyncadd [#allocation4], 4294967280 }
   0xb   :  { %10 = sfence }
   0xc   :  { %11 = vsyncpa [#allocation7], 0  ;;  %s13_s19 = sld [smem:[#allocation5]]  ;;  %s786_s20 = smov [#allocation2]  }
   0xd   :  { %s27_s21 = sshll.u32 %s786_s20, 4  ;;  %s398_s22 = sld [smem:[#allocation5 + $0x1]]  ;;  %s824_s21 = int_to_ptr.vmem [resolvable:$true] %s27_s21 }
   0xe   :  { %s787_s23 = smov [#allocation2 + $0x1]   ;;  %s826_s25 = sld [smem:[#allocation5 + $0x2]] }
   0xf   :  { %s48_s24 = sshll.u32 %s787_s23, 4  ;;  %s788_s26 = smov [#allocation2 + $0x2]   ;;  %s828_s24 = int_to_ptr.vmem [resolvable:$true] %s48_s24 }
  0x10   :  { %s830_s27 = sshll.u32 %s788_s26, 4  ;;  %s832_s0 = sld [smem:[#allocation5 + $0x3]]  ;;  %s70_s27 = int_to_ptr.vmem [resolvable:$true] %s830_s27 }
  0x11   :  { %s841_s8 = scalar_lea.hbm %s1005_s1, 1024 }
  0x12   :  { %p14_p3 = scmp.gt.s32.totalorder %s13_s19, 0  ;;  %p392_p4 = scmp.lt.s32.totalorder %s13_s19, 63 }
  0x13   :  { %p33_p5 = scmp.gt.s32.totalorder %s398_s22, 0  ;;  %p399_p6 = scmp.lt.s32.totalorder %s398_s22, 63 }
  0x14   :  { %s1009_s19 = smov (!%p14_p3, %s13_s19), 0  ;;  %p54_p7 = scmp.gt.s32.totalorder %s826_s25, 0 }
  0x15   :  { %s1011_s22 = smov (!%p33_p5, %s398_s22), 0  ;;  %s1013_s19 = smov (!%p392_p4, %s1009_s19), 63 }
  0x16   :  { %s1015_s22 = smov (!%p399_p6, %s1011_s22), 63  ;;  %s397_s28 = sshll.u32 %s1013_s19, 4 }
  0x17   :  { %s19_s3 = scalar_lea.hbm %s1005_s1, %s397_s28  ;;  %s404_s4 = sshll.u32 %s1015_s22, 4 }
  0x18   :  { %s523_s5 = scalar_lea.hbm %s19_s3, 16  ;;  %p526_p9 = scmp.lt.u32.totalorder %s19_s3, %s1005_s1 }
  0x19   :  { %p524_p8 = scmp.ne.s32.totalorder %s19_s3, %s523_s5  ;;  %p527_p10 = scmp.lt.u32.totalorder %s841_s8, %s523_s5 }
  0x1a   :  { %p529_p12 = scmp.lt.u32.totalorder %s523_s5, %s19_s3 }
  0x1b   :  { %p528_p11 = por %p527_p10, %p526_p9 }
  0x1d   :  { %p530_p13 = por %p529_p12, %p528_p11 }
  0x1f   :  { %p531_p0 = pnand %p530_p13, %p524_p8 }
  0x21   :  { %534 = shalt.err (!%p531_p0)  }
  0x22   :  { %s535_s11 = scalar_lea.vmem %s824_s21, 16  ;;  %s850_s12 = scalar_lea.vmem %s824_s21, 2048 }
  0x23   :  { %p536_p1 = scmp.ne.s32.totalorder %s824_s21, %s535_s11  ;;  %p540_p2 = scmp.lt.s32.totalorder %s824_s21, %s824_s21 }
  0x24   :  { %p541_p3 = scmp.lt.s32.totalorder %s850_s12, %s535_s11 }
  0x26   :  { %p542_p4 = por %p541_p3, %p540_p2 }
  0x28   :  { %p543_p5 = pnand %p542_p4, %p536_p1 }
  0x2a   :  { %546 = shalt.err (!%p543_p5)  }
  0x2b   :  { %30 = dma.hbm_to_vmem [thread:$0]  %s19_s3, 16, %s824_s21, [#allocation3] }
  0x2c   :  { %s38_s15 = scalar_lea.hbm %s1005_s1, %s404_s4  ;;  %p406_p6 = scmp.lt.s32.totalorder %s826_s25, 63 }
  0x2d   :  { %s547_s16 = scalar_lea.hbm %s38_s15, 16  ;;  %p550_p9 = scmp.lt.u32.totalorder %s38_s15, %s1005_s1 }
  0x2e   :  { %p548_p8 = scmp.ne.s32.totalorder %s38_s15, %s547_s16  ;;  %p551_p10 = scmp.lt.u32.totalorder %s841_s8, %s547_s16 }
  0x2f   :  { %p553_p12 = scmp.lt.u32.totalorder %s547_s16, %s38_s15 }
  0x30   :  { %p552_p11 = por %p551_p10, %p550_p9 }
  0x32   :  { %p554_p13 = por %p553_p12, %p552_p11 }
  0x34   :  { %p555_p0 = pnand %p554_p13, %p548_p8 }
  0x36   :  { %558 = shalt.err (!%p555_p0)  }
  0x37   :  { %s559_s19 = scalar_lea.vmem %s828_s24, 16  ;;  %p564_p2 = scmp.lt.s32.totalorder %s828_s24, %s824_s21 }
  0x38   :  { %p560_p1 = scmp.ne.s32.totalorder %s828_s24, %s559_s19  ;;  %p565_p3 = scmp.lt.s32.totalorder %s850_s12, %s559_s19 }
  0x3a   :  { %p566_p4 = por %p565_p3, %p564_p2 }
  0x3c   :  { %p567_p5 = pnand %p566_p4, %p560_p1 }
  0x3e   :  { %570 = shalt.err (!%p567_p5)  }
  0x3f   :  { %51 = dma.hbm_to_vmem [thread:$0]  %s38_s15, 16, %s828_s24, [#allocation3 + $0x1] }
  0x40   :  { %s55_s20 = scalar_select %p54_p7, %s826_s25, 0 }
  0x41   :  { %p75_p8 = scmp.gt.s32.totalorder %s832_s0, 0  ;;  %p413_p9 = scmp.lt.s32.totalorder %s832_s0, 63 }
  0x42   :  { %s1017_s20 = smov (!%p406_p6, %s55_s20), 63 }
  0x43   :  { %s76_s22 = scalar_select %p75_p8, %s832_s0, 0 }
  0x44   :  { %s411_s23 = sshll.u32 %s1017_s20, 4 }
  0x45   :  { %s59_s29 = scalar_lea.hbm %s1005_s1, %s411_s23 }
  0x46   :  { %s571_s30 = scalar_lea.hbm %s59_s29, 16  ;;  %p574_p11 = scmp.lt.u32.totalorder %s59_s29, %s1005_s1 }
  0x47   :  { %p572_p10 = scmp.ne.s32.totalorder %s59_s29, %s571_s30  ;;  %p575_p12 = scmp.lt.u32.totalorder %s841_s8, %s571_s30 }
  0x48   :  { %p577_p7 = scmp.lt.u32.totalorder %s571_s30, %s59_s29 }
  0x49   :  { %p576_p13 = por %p575_p12, %p574_p11 }
  0x4b   :  { %p578_p0 = por %p577_p7, %p576_p13 }
  0x4d   :  { %p579_p1 = pnand %p578_p0, %p572_p10 }
  0x4f   :  { %582 = shalt.err (!%p579_p1)  }
  0x50   :  { %s583_s24 = scalar_lea.vmem %s70_s27, 16  ;;  %p588_p2 = scmp.lt.s32.totalorder %s70_s27, %s824_s21 }
  0x51   :  { %p584_p6 = scmp.ne.s32.totalorder %s70_s27, %s583_s24  ;;  %p589_p3 = scmp.lt.s32.totalorder %s850_s12, %s583_s24 }
  0x53   :  { %p590_p4 = por %p589_p3, %p588_p2 }
  0x55   :  { %p591_p5 = pnand %p590_p4, %p584_p6 }
  0x57   :  { %594 = shalt.err (!%p591_p5)  }
  0x58   :  { %72 = dma.hbm_to_vmem [thread:$0]  %s59_s29, 16, %s70_s27, [#allocation3 + $0x2] }
  0x59   :  { %s1019_s22 = smov (!%p413_p9, %s76_s22), 63  ;;  %s789_s25 = smov [#allocation2 + $0x3]  }
  0x5a   :  { %s90_s5 = sshll.u32 %s789_s25, 4  ;;  %s890_s6 = sld [smem:[#allocation5 + $0x4]]  ;;  %s91_s5 = int_to_ptr.vmem [resolvable:$true] %s90_s5 }
  0x5b   :  { %s418_s7 = sshll.u32 %s1019_s22, 4 }
  0x5c   :  { %s80_s11 = scalar_lea.hbm %s1005_s1, %s418_s7 }
  0x5d   :  { %s595_s13 = scalar_lea.hbm %s80_s11, 16  ;;  %p598_p10 = scmp.lt.u32.totalorder %s80_s11, %s1005_s1 }
  0x5e   :  { %p596_p8 = scmp.ne.s32.totalorder %s80_s11, %s595_s13  ;;  %p599_p11 = scmp.lt.u32.totalorder %s841_s8, %s595_s13 }
  0x5f   :  { %p601_p13 = scmp.lt.u32.totalorder %s595_s13, %s80_s11 }
  0x60   :  { %p600_p12 = por %p599_p11, %p598_p10 }
  0x62   :  { %p602_p9 = por %p601_p13, %p600_p12 }
  0x64   :  { %p603_p7 = pnand %p602_p9, %p596_p8 }
  0x66   :  { %606 = shalt.err (!%p603_p7)  }
  0x67   :  { %s607_s27 = scalar_lea.vmem %s91_s5, 16  ;;  %p612_p1 = scmp.lt.s32.totalorder %s91_s5, %s824_s21 }
  0x68   :  { %p608_p0 = scmp.ne.s32.totalorder %s91_s5, %s607_s27  ;;  %p613_p6 = scmp.lt.s32.totalorder %s850_s12, %s607_s27 }
  0x6a   :  { %p614_p2 = por %p613_p6, %p612_p1 }
  0x6c   :  { %p615_p3 = pnand %p614_p2, %p608_p0 }
  0x6e   :  { %618 = shalt.err (!%p615_p3)  }
  0x6f   :  { %93 = dma.hbm_to_vmem [thread:$0]  %s80_s11, 16, %s91_s5, [#allocation3 + $0x3] }
  0x70   :  { %s901_s0 = sld [smem:[#allocation5 + $0x5]]  ;;  %s790_s16 = smov [#allocation2 + $0x4]  }
  0x71   :  { %s111_s17 = sshll.u32 %s790_s16, 4  ;;  %p96_p4 = scmp.gt.s32.totalorder %s890_s6, 0  ;;  %s112_s17 = int_to_ptr.vmem [resolvable:$true] %s111_s17 }
  0x72   :  { %p420_p5 = scmp.lt.s32.totalorder %s890_s6, 63  ;;  %s905_s18 = sld [smem:[#allocation5 + $0x6]] }
  0x73   :  { %s1021_s6 = smov (!%p96_p4, %s890_s6), 0  ;;  %s791_s19 = smov [#allocation2 + $0x5]  }
  0x74   :  { %s132_s20 = sshll.u32 %s791_s19, 4  ;;  %s1023_s6 = smov (!%p420_p5, %s1021_s6), 63  ;;  %s133_s20 = int_to_ptr.vmem [resolvable:$true] %s132_s20 }
  0x75   :  { %s425_s22 = sshll.u32 %s1023_s6, 4 }
  0x76   :  { %p117_p8 = scmp.gt.s32.totalorder %s901_s0, 0  ;;  %s101_s28 = scalar_lea.hbm %s1005_s1, %s425_s22 }
  0x77   :  { %s619_s29 = scalar_lea.hbm %s101_s28, 16  ;;  %p622_p13 = scmp.lt.u32.totalorder %s101_s28, %s1005_s1 }
  0x78   :  { %p138_p11 = scmp.gt.s32.totalorder %s905_s18, 0  ;;  %p620_p12 = scmp.ne.s32.totalorder %s101_s28, %s619_s29 }
  0x79   :  { %p623_p9 = scmp.lt.u32.totalorder %s841_s8, %s619_s29  ;;  %p625_p0 = scmp.lt.u32.totalorder %s619_s29, %s101_s28 }
  0x7b   :  { %p624_p7 = por %p623_p9, %p622_p13 }
  0x7d   :  { %p626_p1 = por %p625_p0, %p624_p7 }
  0x7f   :  { %p627_p6 = pnand %p626_p1, %p620_p12 }
  0x81   :  { %630 = shalt.err (!%p627_p6)  }
  0x82   :  { %s631_s4 = scalar_lea.vmem %s112_s17, 16  ;;  %p636_p3 = scmp.lt.s32.totalorder %s112_s17, %s824_s21 }
  0x83   :  { %p632_p2 = scmp.ne.s32.totalorder %s112_s17, %s631_s4  ;;  %p637_p4 = scmp.lt.s32.totalorder %s850_s12, %s631_s4 }
  0x85   :  { %p638_p5 = por %p637_p4, %p636_p3 }
  0x87   :  { %p639_p10 = pnand %p638_p5, %p632_p2 }
  0x89   :  { %642 = shalt.err (!%p639_p10)  }
  0x8a   :  { %114 = dma.hbm_to_vmem [thread:$0]  %s101_s28, 16, %s112_s17, [#allocation3 + $0x4] }
  0x8b   :  { %s118_s24 = scalar_select %p117_p8, %s901_s0, 0 }
  0x8c   :  { %s139_s25 = scalar_select %p138_p11, %s905_s18, 0 }
  0x8d   :  { %p1007_p12 = scmp.lt.s32.totalorder %s901_s0, 63  ;;  %p434_p13 = scmp.lt.s32.totalorder %s905_s18, 63 }
  0x8e   :  { %s929_s6 = sld [smem:[#allocation5 + $0x7]]  ;;  %s792_s11 = smov [#allocation2 + $0x6]  }
  0x8f   :  { %s1025_s24 = smov (!%p1007_p12, %s118_s24), 63  ;;  %s153_s13 = sshll.u32 %s792_s11, 4  ;;  %s154_s13 = int_to_ptr.vmem [resolvable:$true] %s153_s13 }
  0x90   :  { %s432_s5 = sshll.u32 %s1025_s24, 4 }
  0x91   :  { %s122_s10 = scalar_lea.hbm %s1005_s1, %s432_s5 }
  0x92   :  { %s643_s14 = scalar_lea.hbm %s122_s10, 16  ;;  %p646_p8 = scmp.lt.u32.totalorder %s122_s10, %s1005_s1 }
  0x93   :  { %p644_p10 = scmp.ne.s32.totalorder %s122_s10, %s643_s14  ;;  %p647_p11 = scmp.lt.u32.totalorder %s841_s8, %s643_s14 }
  0x94   :  { %p649_p7 = scmp.lt.u32.totalorder %s643_s14, %s122_s10 }
  0x95   :  { %p648_p9 = por %p647_p11, %p646_p8 }
  0x97   :  { %p650_p0 = por %p649_p7, %p648_p9 }
  0x99   :  { %p651_p1 = pnand %p650_p0, %p644_p10 }
  0x9b   :  { %654 = shalt.err (!%p651_p1)  }
  0x9c   :  { %s655_s0 = scalar_lea.vmem %s133_s20, 16  ;;  %p660_p2 = scmp.lt.s32.totalorder %s133_s20, %s824_s21 }
  0x9d   :  { %p656_p6 = scmp.ne.s32.totalorder %s133_s20, %s655_s0  ;;  %p661_p3 = scmp.lt.s32.totalorder %s850_s12, %s655_s0 }
  0x9f   :  { %p662_p4 = por %p661_p3, %p660_p2 }
  0xa1   :  { %p663_p5 = pnand %p662_p4, %p656_p6 }
  0xa3   :  { %666 = shalt.err (!%p663_p5)  }
  0xa4   :  { %135 = dma.hbm_to_vmem [thread:$0]  %s122_s10, 16, %s133_s20, [#allocation3 + $0x5] }
  0xa5   :  { %s1027_s25 = smov (!%p434_p13, %s139_s25), 63  ;;  %p159_p12 = scmp.gt.s32.totalorder %s929_s6, 0 }
  0xa6   :  { %s439_s16 = sshll.u32 %s1027_s25, 4 }
  0xa7   :  { %s143_s22 = scalar_lea.hbm %s1005_s1, %s439_s16 }
  0xa8   :  { %s667_s23 = scalar_lea.hbm %s143_s22, 16  ;;  %p670_p8 = scmp.lt.u32.totalorder %s143_s22, %s1005_s1 }
  0xa9   :  { %p668_p10 = scmp.ne.s32.totalorder %s143_s22, %s667_s23  ;;  %p671_p11 = scmp.lt.u32.totalorder %s841_s8, %s667_s23 }
  0xaa   :  { %p673_p7 = scmp.lt.u32.totalorder %s667_s23, %s143_s22 }
  0xab   :  { %p672_p9 = por %p671_p11, %p670_p8 }
  0xad   :  { %p674_p0 = por %p673_p7, %p672_p9 }
  0xaf   :  { %p675_p1 = pnand %p674_p0, %p668_p10 }
  0xb1   :  { %678 = shalt.err (!%p675_p1)  }
  0xb2   :  { %s679_s18 = scalar_lea.vmem %s154_s13, 16  ;;  %p684_p6 = scmp.lt.s32.totalorder %s154_s13, %s824_s21 }
  0xb3   :  { %p680_p13 = scmp.ne.s32.totalorder %s154_s13, %s679_s18  ;;  %p685_p2 = scmp.lt.s32.totalorder %s850_s12, %s679_s18 }
  0xb5   :  { %p686_p3 = por %p685_p2, %p684_p6 }
  0xb7   :  { %p687_p4 = pnand %p686_p3, %p680_p13 }
  0xb9   :  { %690 = shalt.err (!%p687_p4)  }
  0xba   :  { %156 = dma.hbm_to_vmem [thread:$0]  %s143_s22, 16, %s154_s13, [#allocation3 + $0x6] }
  0xbb   :  { %s160_s20 = scalar_select %p159_p12, %s929_s6, 0 }
  0xbc   :  { %p441_p5 = scmp.lt.s32.totalorder %s929_s6, 63  ;;  %s793_s29 = smov [#allocation2 + $0x7]  }
  0xbd   :  { %s174_s30 = sshll.u32 %s793_s29, 4  ;;  %s175_s30 = int_to_ptr.vmem [resolvable:$true] %s174_s30 }
  0xbe   :  { %s1029_s20 = smov (!%p441_p5, %s160_s20), 63 }
  0xbf   :  { %s446_s3 = sshll.u32 %s1029_s20, 4 }
  0xc0   :  { %s164_s25 = scalar_lea.hbm %s1005_s1, %s446_s3 }
  0xc1   :  { %s691_s5 = scalar_lea.hbm %s164_s25, 16  ;;  %p694_p8 = scmp.lt.u32.totalorder %s164_s25, %s1005_s1 }
  0xc2   :  { %p692_p10 = scmp.ne.s32.totalorder %s164_s25, %s691_s5  ;;  %p695_p11 = scmp.lt.u32.totalorder %s841_s8, %s691_s5 }
  0xc3   :  { %p697_p7 = scmp.lt.u32.totalorder %s691_s5, %s164_s25 }
  0xc4   :  { %p696_p9 = por %p695_p11, %p694_p8 }
  0xc6   :  { %p698_p12 = por %p697_p7, %p696_p9 }
  0xc8   :  { %p699_p0 = pnand %p698_p12, %p692_p10 }
  0xca   :  { %702 = shalt.err (!%p699_p0)  }
  0xcb   :  { %s703_s6 = scalar_lea.vmem %s175_s30, 16  ;;  %p708_p13 = scmp.lt.s32.totalorder %s175_s30, %s824_s21 }
  0xcc   :  { %p704_p1 = scmp.ne.s32.totalorder %s175_s30, %s703_s6  ;;  %p709_p6 = scmp.lt.s32.totalorder %s850_s12, %s703_s6 }
  0xce   :  { %p710_p2 = por %p709_p6, %p708_p13 }
  0xd0   :  { %p711_p3 = pnand %p710_p2, %p704_p1 }
  0xd2   :  { %714 = shalt.err (!%p711_p3)  }
  0xd3   :  { %177 = dma.hbm_to_vmem [thread:$0]  %s164_s25, 16, %s175_s30, [#allocation3 + $0x7] }
  0xd4   :  { %s965_s10 = smov 8  }
  0xd5 LB: > { %p184_p4 = scmp.lt.s32.totalorder %s779_s10, 0  ;;  %s185_s11 = ssub.s32 0, %s779_s10  ;;  %s779_s10 = sphi %s965_s10, %s183_s10  }
  0xd6   : > { %s447_s13 = smin.u32 %s779_s10, %s185_s11 }
  0xd7   : > { %s187_s14 = sand.u32 7, %s447_s13  }
  0xd8   : > { %s188_s15 = ssub.s32 0, %s187_s14 }
  0xd9   : > { %s1031_s15 = smov (!%p184_p4, %s188_s15), %s187_s14 }
  0xda   : > { %p449_p5 = scmp.lt.s32.totalorder %s1031_s15, 0  ;;  %s194_s27 = sadd.s32 8, %s1031_s15 }
  0xdc   : > { %s1033_s27 = smov (!%p449_p5, %s194_s27), %s1031_s15 }
  0xdd   : > { %s973_s0 = scalar_lea.sflag [#allocation3], %s1033_s27 }
  0xde   : > { %771 = dma.done.wait %s973_s0, 16 }
  0xdf   : > { %772 = vsyncadd %s973_s0, 4294967280  ;;  %s201_s16 = sld [smem:[#allocation5 + %s779_s10]]  ;;  %s208_s17 = scalar_lea.vmem [#allocation2], %s779_s10 }
  0xe0   : > { %s216_s19 = sshll.u32 %s208_s17, 4  ;;  %s217_s19 = int_to_ptr.vmem [resolvable:$true] %s216_s19 }
  0xe5   : > { %p202_p10 = scmp.gt.s32.totalorder %s201_s16, 0  ;;  %p450_p8 = scmp.lt.s32.totalorder %s201_s16, 63 }
  0xe7   : > { %s1035_s16 = smov (!%p202_p10, %s201_s16), 0 }
  0xe8   : > { %s1037_s16 = smov (!%p450_p8, %s1035_s16), 63 }
  0xe9   : > { %s455_s22 = sshll.u32 %s1037_s16, 4 }
  0xea   : > { %s207_s28 = scalar_lea.hbm %s1005_s1, %s455_s22 }
  0xeb   : > { %s715_s18 = scalar_lea.hbm %s207_s28, 16  ;;  %p718_p9 = scmp.lt.u32.totalorder %s207_s28, %s1005_s1 }
  0xec   : > { %p716_p11 = scmp.ne.s32.totalorder %s207_s28, %s715_s18  ;;  %p719_p7 = scmp.lt.u32.totalorder %s841_s8, %s715_s18 }
  0xed   : > { %p721_p0 = scmp.lt.u32.totalorder %s715_s18, %s207_s28 }
  0xee   : > { %p720_p12 = por %p719_p7, %p718_p9 }
  0xf0   : > { %p722_p1 = por %p721_p0, %p720_p12 }
  0xf2   : > { %p723_p13 = pnand %p722_p1, %p716_p11 }
  0xf4   : > { %726 = shalt.err (!%p723_p13)  }
  0xf5   : > { %s727_s30 = scalar_lea.vmem %s217_s19, 16  ;;  %p732_p2 = scmp.lt.s32.totalorder %s217_s19, %s824_s21 }
  0xf6   : > { %p728_p6 = scmp.ne.s32.totalorder %s217_s19, %s727_s30  ;;  %p733_p3 = scmp.lt.s32.totalorder %s850_s12, %s727_s30 }
  0xf8   : > { %p734_p4 = por %p733_p3, %p732_p2 }
  0xfa   : > { %p735_p5 = pnand %p734_p4, %p728_p6 }
  0xfc   : > { %738 = shalt.err (!%p735_p5)  }
  0xfd   : > { %219 = dma.hbm_to_vmem [thread:$0]  %s207_s28, 16, %s217_s19, %s973_s0 }
  0xfe   : > { %s183_s10 = sadd.s32 1, %s779_s10  }
  0xff   : > { %p180_p10 = scmp.ge.s32.totalorder %s183_s10, 128  }
 0x100   :  { %s781_s3 = smov (%p180_p10), 120  }
 0x101   :  { %182 = sbr.rel (!%p180_p10) target bundleno = 213 (0xd5), region = 103 }
 0x108 LB: > { %p226_p8 = scmp.lt.s32.totalorder %s783_s3, 0  ;;  %s227_s4 = ssub.s32 0, %s783_s3  ;;  %s783_s3 = sphi %s781_s3, %s225_s3  }
 0x109   : > { %s456_s24 = smin.u32 %s783_s3, %s227_s4 }
 0x10a   : > { %s229_s25 = sand.u32 7, %s456_s24  }
 0x10b   : > { %s230_s5 = ssub.s32 0, %s229_s25 }
 0x10c   : > { %s1039_s5 = smov (!%p226_p8, %s230_s5), %s229_s25 }
 0x10d   : > { %p458_p11 = scmp.lt.s32.totalorder %s1039_s5, 0  ;;  %s236_s7 = sadd.s32 8, %s1039_s5 }
 0x10f   : > { %s1041_s7 = smov (!%p458_p11, %s236_s7), %s1039_s5 }
 0x110   : > { %s238_s9 = scalar_lea.sflag [#allocation3], %s1041_s7 }
 0x111   : > { %773 = dma.done.wait %s238_s9, 16 }
 0x112   : > { %774 = vsyncadd %s238_s9, 4294967280  ;;  %s225_s3 = sadd.s32 1, %s783_s3  }
 0x113   : > { %p222_p9 = scmp.ge.s32.totalorder %s225_s3, 128  }
 0x114   :  { %v242_v0 = vld [vmem:[#allocation2] sm:$0xff] (%p222_p9)  ;;  %v243_v1 = vld [vmem:[#allocation2 + $0x8] sm:$0xff] (%p222_p9)  ;;  %v244_v2 = vld [vmem:[#allocation2 + $0x10] sm:$0xff] (%p222_p9)  ;;  %s794_s1 = smov (%p222_p9), [#allocation6]  }
 0x115   :  { %224 = sbr.rel (!%p222_p9) target bundleno = 264 (0x108), region = 114  ;;  %v258_v3 = vmul.f32 (%p222_p9), 11.313708, %v242_v0  ;;  %v259_v4 = vmul.f32 (%p222_p9), 11.313708, %v243_v1  ;;  %v245_v6 = vld [vmem:[#allocation2 + $0x18] sm:$0xff] (%p222_p9) }
 0x116   :  { %v260_v5 = vmul.f32 (%p222_p9), 11.313708, %v244_v2  ;;  %v246_v7 = vld [vmem:[#allocation2 + $0x20] sm:$0xff] (%p222_p9)  ;;  %v247_v8 = vld [vmem:[#allocation2 + $0x28] sm:$0xff] (%p222_p9)  ;;  %v261_v9 = vmul.f32 (%p222_p9), 11.313708, %v245_v6 }
 0x117   :  { %274 = vst [vmem:[#allocation6] sm:$0xff] (%p222_p9), %v258_v3  ;;  %275 = vst [vmem:[#allocation6 + $0x8] sm:$0xff] (%p222_p9), %v259_v4  ;;  %v262_v10 = vmul.f32 (%p222_p9), 11.313708, %v246_v7  ;;  %v263_v11 = vmul.f32 (%p222_p9), 11.313708, %v247_v8 }
 0x118   :  { %276 = vst [vmem:[#allocation6 + $0x10] sm:$0xff] (%p222_p9), %v260_v5  ;;  %v248_v12 = vld [vmem:[#allocation2 + $0x30] sm:$0xff] (%p222_p9)  ;;  %v249_v13 = vld [vmem:[#allocation2 + $0x38] sm:$0xff] (%p222_p9)  ;;  %v250_v14 = vld [vmem:[#allocation2 + $0x40] sm:$0xff] (%p222_p9)  ;;  %s295_s21 = sshll.u32 (%p222_p9), %s794_s1, 4  ;;  %s296_s21 = int_to_ptr.vmem [resolvable:$true] %s295_s21 }
 0x119   :  { %277 = vst [vmem:[#allocation6 + $0x18] sm:$0xff] (%p222_p9), %v261_v9  ;;  %278 = vst [vmem:[#allocation6 + $0x20] sm:$0xff] (%p222_p9), %v262_v10  ;;  %v264_v15 = vmul.f32 (%p222_p9), 11.313708, %v248_v12  ;;  %v265_v16 = vmul.f32 (%p222_p9), 11.313708, %v249_v13  ;;  %p744_p12 = scmp.lt.s32.totalorder (%p222_p9), %s296_s21, %s296_s21 }
 0x11a   :  { %279 = vst [vmem:[#allocation6 + $0x28] sm:$0xff] (%p222_p9), %v263_v11  ;;  %v266_v17 = vmul.f32 (%p222_p9), 11.313708, %v250_v14  ;;  %v251_v18 = vld [vmem:[#allocation2 + $0x48] sm:$0xff] (%p222_p9)  ;;  %v252_v19 = vld [vmem:[#allocation2 + $0x50] sm:$0xff] (%p222_p9)  ;;  %v253_v20 = vld [vmem:[#allocation2 + $0x58] sm:$0xff] (%p222_p9) }
 0x11b   :  { %280 = vst [vmem:[#allocation6 + $0x30] sm:$0xff] (%p222_p9), %v264_v15  ;;  %281 = vst [vmem:[#allocation6 + $0x38] sm:$0xff] (%p222_p9), %v265_v16  ;;  %v267_v21 = vmul.f32 (%p222_p9), 11.313708, %v251_v18  ;;  %v268_v22 = vmul.f32 (%p222_p9), 11.313708, %v252_v19 }
 0x11c   :  { %282 = vst [vmem:[#allocation6 + $0x40] sm:$0xff] %v266_v17  ;;  %v269_v23 = vmul.f32 11.313708, %v253_v20  ;;  %v254_v24 = vld [vmem:[#allocation2 + $0x60] sm:$0xff]  ;;  %v255_v25 = vld [vmem:[#allocation2 + $0x68] sm:$0xff]  ;;  %v256_v26 = vld [vmem:[#allocation2 + $0x70] sm:$0xff] }
 0x11d   :  { %283 = vst [vmem:[#allocation6 + $0x48] sm:$0xff] %v267_v21  ;;  %284 = vst [vmem:[#allocation6 + $0x50] sm:$0xff] %v268_v22  ;;  %v270_v27 = vmul.f32 11.313708, %v254_v24  ;;  %v271_v28 = vmul.f32 11.313708, %v255_v25 }
 0x11e   :  { %285 = vst [vmem:[#allocation6 + $0x58] sm:$0xff] %v269_v23  ;;  %v272_v29 = vmul.f32 11.313708, %v256_v26  ;;  %v257_v30 = vld [vmem:[#allocation2 + $0x78] sm:$0xff]  ;;  %s739_s8 = scalar_lea.vmem %s296_s21, 2048 }
 0x11f   :  { %286 = vst [vmem:[#allocation6 + $0x60] sm:$0xff] %v270_v27  ;;  %287 = vst [vmem:[#allocation6 + $0x68] sm:$0xff] %v271_v28  ;;  %v273_v31 = vmul.f32 11.313708, %v257_v30  ;;  %p740_p7 = scmp.ne.s32.totalorder %s296_s21, %s739_s8  ;;  %p745_p0 = scmp.lt.s32.totalorder %s739_s8, %s739_s8 }
 0x120   :  { %288 = vst [vmem:[#allocation6 + $0x70] sm:$0xff] %v272_v29 }
 0x121   :  { %289 = vst [vmem:[#allocation6 + $0x78] sm:$0xff] %v273_v31  ;;  %p746_p1 = por %p745_p0, %p744_p12 }
 0x123   :  { %p747_p13 = pnand %p746_p1, %p740_p7 }
 0x125   :  { %750 = shalt.err (!%p747_p13)
}
 0x126   :  { %s751_s10 = scalar_lea.hbm %s1006_s2, 2048 }
 0x127   :  { %p752_p6 = scmp.ne.s32.totalorder %s1006_s2, %s751_s10  ;;  %p755_p2 = scmp.lt.u32.totalorder %s751_s10, %s1006_s2 }
 0x129   :  { %p757_p3 = pnand %p755_p2, %p752_p6 }
 0x12b   :  { %760 = shalt.err (!%p757_p3)
}
 0x12c   :  { %s795_s27 = smov 128   ;;  %s796_s0 = smov 8  }
 0x12d   :  { %301 = dma.vmem_to_hbm [thread:$0]  %s296_s21, 2048, %s1006_s2, [#allocation7], %s795_s27, %s795_s27, %s796_s0  }
 0x12e   :  { %775 = dma.done.wait [#allocation7], 2048  }
 0x12f   :  { %776 = vsyncadd [#allocation7], 4294965248 }
 0x130   :  { %305 = vsyncpa [#allocation7], 1 }
 0x131   :  { %306 = vsyncmov [#allocation3] }
 0x134   :  { %s307_s19 = vpop.sfrf %306 }
 0x135   :  { %p459_p4 = scmp.ne.s32.totalorder %s307_s19, 0 }
 0x137   :  { %311 = shalt.err (%p459_p4)  }
 0x138   :  { %313 = vsyncmov [#allocation3 + $0x1] }
 0x13b   :  { %s314_s22 = vpop.sfrf %313 }
 0x13c   :  { %p460_p5 = scmp.ne.s32.totalorder %s314_s22, 0 }
 0x13e   :  { %318 = shalt.err (%p460_p5)  }
 0x13f   :  { %320 = vsyncmov [#allocation3 + $0x2] }
 0x142   :  { %s321_s23 = vpop.sfrf %320 }
 0x143   :  { %p461_p10 = scmp.ne.s32.totalorder %s321_s23, 0 }
 0x145   :  { %325 = shalt.err (%p461_p10)  }
 0x146   :  { %327 = vsyncmov [#allocation3 + $0x3] }
 0x149   :  { %s328_s26 = vpop.sfrf %327 }
 0x14a   :  { %p462_p8 = scmp.ne.s32.totalorder %s328_s26, 0 }
 0x14c   :  { %332 = shalt.err (%p462_p8)  }
 0x14d   :  { %334 = vsyncmov [#allocation3 + $0x4] }
 0x150   :  { %s335_s2 = vpop.sfrf %334 }
 0x151   :  { %p463_p11 = scmp.ne.s32.totalorder %s335_s2, 0 }
 0x153   :  { %339 = shalt.err (%p463_p11)  }
 0x154   :  { %341 = vsyncmov [#allocation3 + $0x5] }
 0x157   :  { %s342_s28 = vpop.sfrf %341 }
 0x158   :  { %p464_p9 = scmp.ne.s32.totalorder %s342_s28, 0 }
 0x15a   :  { %346 = shalt.err (%p464_p9)  }
 0x15b   :  { %348 = vsyncmov [#allocation3 + $0x6] }
 0x15e   :  { %s349_s18 = vpop.sfrf %348 }
 0x15f   :  { %p465_p7 = scmp.ne.s32.totalorder %s349_s18, 0 }
 0x161   :  { %353 = shalt.err (%p465_p7)  }
 0x162   :  { %355 = vsyncmov [#allocation3 + $0x7] }
 0x165   :  { %s356_s20 = vpop.sfrf %355 }
 0x166   :  { %p466_p12 = scmp.ne.s32.totalorder %s356_s20, 0 }
 0x168   :  { %360 = shalt.err (%p466_p12)  }

</bundles_post_ra>
